<compile_context>
chip_gen: v7x
topology: tpu7x:2x2x1
jax: 0.10.0
libtpu: 0.0.40
codegen_flags: <defaults>
</compile_context>

<pallas_src>
import functools

import numpy as np
import jax
import jax.numpy as jnp
from jax.experimental import pallas as pl
from jax.experimental.pallas import tpu as pltpu


def _round_up(v, m):
    return (v + m - 1) // m * m


def calayer_kernel(x_ref, w1t_ref, w2_ref, o_ref, *, inv_hw):
    # x_ref : (B_blk, C, HWp)  block of images; HWp lane-dense, zero-padded past
    #                          the true H*W (padding does not affect the sum).
    # w1t_ref: (C, C//r)       transposed "squeeze" 1x1 conv weight (bias-free)
    # w2_ref : (C, C//r)       "excite" 1x1 conv weight (bias-free)
    # o_ref : (B_blk, C, HWp)
    x = x_ref[...]                                                  # native dtype

    # AdaptiveAvgPool2d(1): lane reduction with f32 accumulation; divide by the
    # TRUE spatial size (zero padding contributes nothing to the sum).
    pooled = jnp.sum(x, axis=2, keepdims=True, dtype=jnp.float32) * jnp.float32(inv_hw)
    # pooled: (B_blk, C, 1)

    # conv_du: 1x1 conv -> ReLU -> 1x1 conv -> Sigmoid on the pooled column.
    # Done as VPU broadcast-multiply + reductions (C, C//r are tiny; keep the
    # ~64-MAC matvecs off the MXU push/drain path).
    w1t = w1t_ref[...].astype(jnp.float32)                          # (C, Cr)
    w2 = w2_ref[...].astype(jnp.float32)                            # (C, Cr)
    h = jnp.sum(pooled * w1t[None, :, :], axis=1, keepdims=True)    # (B_blk, 1, Cr)
    h = jnp.maximum(h, 0.0)
    s = jnp.sum(h * w2[None, :, :], axis=2, keepdims=True)          # (B_blk, C, 1)
    s = jax.nn.sigmoid(s)

    # Per-channel rescale in the input's native dtype: one store per output vreg,
    # no wholesale f32 copy of x.
    o_ref[...] = x * s.astype(o_ref.dtype)


def calayer(x, conv1_weight, conv2_weight):
    """x: (N, C, H, W); conv1_weight: (C//r, C, 1, 1); conv2_weight: (C, C//r, 1, 1)."""
    n, c, h, w = x.shape
    hw = h * w
    cr = conv1_weight.shape[0]
    itemsize = jnp.dtype(x.dtype).itemsize

    # Lane-dense spatial slab, padded to a multiple of 128 so every load/store is
    # a full (unmasked) vld/vst.
    hwp = _round_up(hw, 128)
    x2 = x.reshape(n, c, hw)
    if hwp != hw:
        x2 = jnp.pad(x2, ((0, 0), (0, 0), (0, hwp - hw)))

    w1t = conv1_weight.reshape(cr, c).T    # (C, Cr) -- transposed at trace time
    w2 = conv2_weight.reshape(c, cr)       # (C, Cr)

    # Pack as many whole images per grid step as fit an ~8 MiB block budget
    # (amortizes per-step overhead; bigger, more efficient DMAs).
    per_img = c * hwp * itemsize
    max_block_bytes = 8 << 20
    b_blk = 1
    for b in range(1, n + 1):
        if n % b == 0 and b * per_img <= max_block_bytes:
            b_blk = b
    # TODO(synk): if a single image exceeds the block budget (huge H*W, esp. on
    # v7x's 64 MiB VMEM) or N is tiny, switch to a two-pass kernel: a pool-sum
    # pass over an (n, HW//t) grid, then a rescale pass, instead of one
    # full-spatial block per image.

    block_bytes = b_blk * per_img
    # Double-buffered input + output blocks, plus slack; safe on v7x (64 MiB
    # physical) and above v5e's 16 MiB default scoped budget.
    vmem_limit = int(min(max(4 * block_bytes + (4 << 20), 32 << 20), 56 << 20))

    kernel = functools.partial(calayer_kernel, inv_hw=1.0 / hw)

    cost = pl.CostEstimate(
        flops=int(2 * n * c * hwp + 4 * n * c * cr),
        transcendentals=int(n * c),
        bytes_accessed=int(2 * n * c * hwp * itemsize + 2 * c * cr * itemsize),
    )

    out = pl.pallas_call(
        kernel,
        out_shape=jax.ShapeDtypeStruct((n, c, hwp), x.dtype),
        grid_spec=pltpu.PrefetchScalarGridSpec(
            num_scalar_prefetch=0,
            grid=(n // b_blk,),
            in_specs=[
                pl.BlockSpec((b_blk, c, hwp), lambda i: (i, 0, 0)),
                pl.BlockSpec((c, cr), lambda i: (0, 0)),   # weights VMEM-resident
                pl.BlockSpec((c, cr), lambda i: (0, 0)),
            ],
            out_specs=pl.BlockSpec((b_blk, c, hwp), lambda i: (i, 0, 0)),
        ),
        compiler_params=pltpu.CompilerParams(
            dimension_semantics=("parallel",),   # disjoint output blocks per step
            vmem_limit_bytes=vmem_limit,
        ),
        cost_estimate=cost,
    )(x2, w1t, w2)

    if hwp != hw:
        out = out[:, :, :hw]
    return out.reshape(n, c, h, w)


if __name__ == "__main__":
    # CALayer(channel=32, reduction=16, bias=False)
    channel, reduction = 32, 16
    N, H, W = 2, 16, 16
    cr = channel // reduction

    key = jax.random.PRNGKey(0)
    kx, k1, k2 = jax.random.split(key, 3)
    x = jax.random.normal(kx, (N, channel, H, W), dtype=jnp.float32)
    conv1_weight = jax.random.normal(k1, (cr, channel, 1, 1), dtype=jnp.float32) * 0.1
    conv2_weight = jax.random.normal(k2, (channel, cr, 1, 1), dtype=jnp.float32) * 0.1

    out = calayer(x, conv1_weight, conv2_weight)
    out = jax.block_until_ready(out)

    # Pure-JAX reference of the PyTorch forward:
    # y = sigmoid(W2 @ relu(W1 @ avgpool(x))); return x * y
    pooled = jnp.mean(x, axis=(2, 3), keepdims=True)                            # (N, C, 1, 1)
    hmid = jnp.einsum('oc,ncij->noij', conv1_weight.reshape(cr, channel), pooled)
    hmid = jnp.maximum(hmid, 0.0)
    s = jnp.einsum('oc,ncij->noij', conv2_weight.reshape(channel, cr), hmid)
    s = jax.nn.sigmoid(s)
    ref = x * s

    assert out.shape == (N, channel, H, W)
    np.testing.assert_allclose(np.asarray(out), np.asarray(ref), rtol=1e-5, atol=1e-5)

    print("KERNEL_OK")
</pallas_src>

<mosaic_0001>
module attributes {stable_mosaic.version = 11 : i64} {
  func.func @calayer_kernel(%arg0: i32, %arg1: memref<2x32x256xf32, #tpu.memory_space<vmem>>, %arg2: memref<32x2xf32, #tpu.memory_space<vmem>>, %arg3: memref<32x2xf32, #tpu.memory_space<vmem>>, %arg4: memref<2x32x256xf32, #tpu.memory_space<vmem>>) attributes {dimension_semantics = [#tpu.dimension_semantics<parallel>], iteration_bounds = array<i64: 1>, scalar_prefetch = 0 : i64, scratch_operands = 0 : i64, tpu.core_type = #tpu.core_type<tc>, window_params = [{transform_indices = @transform_0, window_bounds = array<i64: 2, 32, 256>}, {pipeline_mode = #tpu.pipeline_mode<synchronous>, transform_indices = @transform_1, window_bounds = array<i64: 32, 2>}, {pipeline_mode = #tpu.pipeline_mode<synchronous>, transform_indices = @transform_2, window_bounds = array<i64: 32, 2>}, {transform_indices = @transform_3, window_bounds = array<i64: 2, 32, 256>}]} {
    %c0 = arith.constant 0 : index
    %c0_0 = arith.constant 0 : index
    %c0_1 = arith.constant 0 : index
    %0 = vector.load %arg1[%c0, %c0_0, %c0_1] : memref<2x32x256xf32, #tpu.memory_space<vmem>>, vector<2x32x256xf32>
    %cst = arith.constant dense<0.000000e+00> : vector<2x32xf32>
    %1 = vector.multi_reduction <add>, %0, %cst [2] : vector<2x32x256xf32> to vector<2x32xf32>
    %2 = vector.shape_cast %1 : vector<2x32xf32> to vector<2x32x1xf32>
    %cst_2 = arith.constant 3.906250e-03 : f32
    %3 = vector.broadcast %cst_2 : f32 to vector<2x32x1xf32>
    %4 = arith.mulf %2, %3 : vector<2x32x1xf32>
    %c0_3 = arith.constant 0 : index
    %c0_4 = arith.constant 0 : index
    %5 = vector.load %arg2[%c0_3, %c0_4] : memref<32x2xf32, #tpu.memory_space<vmem>>, vector<32x2xf32>
    %c0_5 = arith.constant 0 : index
    %c0_6 = arith.constant 0 : index
    %6 = vector.load %arg3[%c0_5, %c0_6] : memref<32x2xf32, #tpu.memory_space<vmem>>, vector<32x2xf32>
    %7 = vector.shape_cast %5 : vector<32x2xf32> to vector<1x32x2xf32>
    %8 = vector.broadcast %4 : vector<2x32x1xf32> to vector<2x32x2xf32>
    %9 = vector.broadcast %7 : vector<1x32x2xf32> to vector<2x32x2xf32>
    %10 = arith.mulf %8, %9 : vector<2x32x2xf32>
    %cst_7 = arith.constant dense<0.000000e+00> : vector<2x2xf32>
    %11 = vector.multi_reduction <add>, %10, %cst_7 [1] : vector<2x32x2xf32> to vector<2x2xf32>
    %12 = vector.shape_cast %11 : vector<2x2xf32> to vector<2x1x2xf32>
    %cst_8 = arith.constant 0.000000e+00 : f32
    %13 = vector.broadcast %cst_8 : f32 to vector<2x1x2xf32>
    %14 = arith.maximumf %12, %13 : vector<2x1x2xf32>
    %15 = vector.shape_cast %6 : vector<32x2xf32> to vector<1x32x2xf32>
    %16 = vector.broadcast %14 : vector<2x1x2xf32> to vector<2x32x2xf32>
    %17 = vector.broadcast %15 : vector<1x32x2xf32> to vector<2x32x2xf32>
    %18 = arith.mulf %16, %17 : vector<2x32x2xf32>
    %cst_9 = arith.constant dense<0.000000e+00> : vector<2x32xf32>
    %19 = vector.multi_reduction <add>, %18, %cst_9 [2] : vector<2x32x2xf32> to vector<2x32xf32>
    %20 = vector.shape_cast %19 : vector<2x32xf32> to vector<2x32x1xf32>
    %21 = arith.negf %20 : vector<2x32x1xf32>
    %22 = math.exp %21 : vector<2x32x1xf32>
    %cst_10 = arith.constant 1.000000e+00 : f32
    %23 = vector.broadcast %cst_10 : f32 to vector<2x32x1xf32>
    %24 = arith.addf %23, %22 : vector<2x32x1xf32>
    %25 = arith.divf %23, %24 : vector<2x32x1xf32>
    %26 = vector.broadcast %25 : vector<2x32x1xf32> to vector<2x32x256xf32>
    %27 = arith.mulf %0, %26 : vector<2x32x256xf32>
    %c0_11 = arith.constant 0 : index
    %c0_12 = arith.constant 0 : index
    %c0_13 = arith.constant 0 : index
    %28 = vector.load %arg4[%c0_11, %c0_12, %c0_13] : memref<2x32x256xf32, #tpu.memory_space<vmem>>, vector<2x32x256xf32>
    tpu.vector_store %arg4[%c0_11, %c0_12, %c0_13], %27 {strides = array<i32>} : memref<2x32x256xf32, #tpu.memory_space<vmem>>, vector<2x32x256xf32>,
    return
  }
  func.func @transform_0(%arg0: i32) -> (i32, i32, i32) {
    %c0_i32 = arith.constant 0 : i32
    %c0_i32_0 = arith.constant 0 : i32
    %c0_i32_1 = arith.constant 0 : i32
    return %arg0, %c0_i32, %c0_i32_0 : i32, i32, i32
  }
  func.func @transform_1(%arg0: i32) -> (i32, i32) {
    %c0_i32 = arith.constant 0 : i32
    %c0_i32_0 = arith.constant 0 : i32
    %c0_i32_1 = arith.constant 0 : i32
    return %c0_i32, %c0_i32_0 : i32, i32
  }
  func.func @transform_2(%arg0: i32) -> (i32, i32) {
    %c0_i32 = arith.constant 0 : i32
    %c0_i32_0 = arith.constant 0 : i32
    %c0_i32_1 = arith.constant 0 : i32
    return %c0_i32, %c0_i32_0 : i32, i32
  }
  func.func @transform_3(%arg0: i32) -> (i32, i32, i32) {
    %c0_i32 = arith.constant 0 : i32
    %c0_i32_0 = arith.constant 0 : i32
    %c0_i32_1 = arith.constant 0 : i32
    return %arg0, %c0_i32, %c0_i32_0 : i32, i32, i32
  }
}

</mosaic_0001>

<bundles_post_ra>
// kernel: tpu_custom_call.1
= control target key start
LH: loop header
LB: loop body
LE: loop exit
PB: predicated region body
PF: predicated region fallthrough
CT: control target
= control target key end

     0   :  { %8 = vsyncpa [#allocation3], 0  ;;  %s501_s0 = inlined_call_operand.hbm [shape: f32[2,32,256], index: 0, kind: input, shape index: {}]   ;;  %s502_s1 = inlined_call_operand.vmem [shape: f32[32,2], index: 1, kind: input, shape index: {}]   ;;  %s503_s2 = inlined_call_operand.vmem [shape: f32[32,2], index: 2, kind: input, shape index: {}]   ;;  %s504_s3 = inlined_call_operand.hbm [shape: f32[2,32,256], index: 3, kind: output, shape index: {}]  }
   0x1   :  { %9 = vsyncpa [#allocation4], 0  ;;  %s343_s12 = smov [#allocation2]   ;;  %s295_s16 = scalar_lea.hbm %s501_s0, 2048 }
   0x2   :  { %s15_s13 = sshll.u32 %s343_s12, 4  ;;  %p296_p0 = scmp.ne.s32.totalorder %s501_s0, %s295_s16  ;;  %s16_s13 = int_to_ptr.vmem [resolvable:$true] %s15_s13 }
   0x3   :  { %p299_p1 = scmp.lt.u32.totalorder %s295_s16, %s501_s0 }
   0x5   :  { %p301_p2 = pnand %p299_p1, %p296_p0 }
   0x7   :  { %304 = shalt.err (!%p301_p2)
}
   0x8   :  { %s305_s21 = scalar_lea.vmem %s16_s13, 2048  ;;  %p310_p4 = scmp.lt.s32.totalorder %s16_s13, %s16_s13 }
   0x9   :  { %p306_p3 = scmp.ne.s32.totalorder %s16_s13, %s305_s21  ;;  %p311_p5 = scmp.lt.s32.totalorder %s305_s21, %s305_s21 }
   0xb   :  { %p312_p6 = por %p311_p5, %p310_p4 }
   0xd   :  { %p313_p7 = pnand %p312_p6, %p306_p3 }
   0xf   :  { %316 = shalt.err (!%p313_p7)
}
  0x10   :  { %s344_s22 = smov 256   ;;  %s345_s23 = smov 16  }
  0x11   :  { %21 = dma.hbm_to_vmem [thread:$0]  %s501_s0, 2048, %s16_s13, [#allocation3], %s344_s22, %s344_s22, %s345_s23  }
  0x12   :  { %339 = dma.done.wait [#allocation3], 2048  }
  0x13   :  { %340 = vsyncadd [#allocation3], 4294965248  ;;  %v382_v0 = vld [vmem:[#allocation2 + $0x40] sm:$0xff]  ;;  %v384_v1 = vld [vmem:[#allocation2 + $0x48] sm:$0xff]  ;;  %vm93_vm0 = vcmask 15360  }
  0x14   :  { %v386_v2 = vld [vmem:[#allocation2] sm:$0xff]  ;;  %v57_v3 = vadd.f32 %v384_v1, %v382_v0  ;;  %v390_v4 = vld [vmem:[#allocation2 + $0x8] sm:$0xff]  ;;  %v392_v5 = vld [vmem:[#allocation2 + $0x50] sm:$0xff] }
  0x15   :  { %v394_v6 = vld [vmem:[#allocation2 + $0x58] sm:$0xff]  ;;  %v45_v7 = vadd.f32 %v390_v4, %v386_v2  ;;  %v398_v8 = vld [vmem:[#allocation2 + $0x10] sm:$0xff]  ;;  %v406_v12 = vld [vmem:[#allocation2 + $0x60] sm:$0xff] }
  0x16   :  { %v400_v9 = vld [vmem:[#allocation2 + $0x18] sm:$0xff]  ;;  %58 = vadd.xlane.f32.xlu1 %v57_v3  ;;  %v60_v10 = vadd.f32 %v394_v6, %v392_v5  ;;  %v408_v13 = vld [vmem:[#allocation2 + $0x68] sm:$0xff]  ;;  %v410_v14 = vld [vmem:[#allocation2 + $0x20] sm:$0xff] }
  0x17   :  { %46 = vadd.xlane.f32.xlu0 %v45_v7  ;;  %v48_v11 = vadd.f32 %v400_v9, %v398_v8  ;;  %v412_v15 = vld [vmem:[#allocation2 + $0x28] sm:$0xff]  ;;  %v63_v16 = vadd.f32 %v408_v13, %v406_v12  ;;  %v418_v18 = vld [vmem:[#allocation2 + $0x70] sm:$0xff]  ;;  %v420_v19 = vld [vmem:[#allocation2 + $0x78] sm:$0xff] }
  0x18   :  { %v51_v17 = vadd.f32 %v412_v15, %v410_v14  ;;  %v422_v20 = vld [vmem:[#allocation2 + $0x30] sm:$0xff]  ;;  %v424_v21 = vld [vmem:[#allocation2 + $0x38] sm:$0xff]  ;;  %v66_v22 = vadd.f32 %v420_v19, %v418_v18  ;;  %v77_v27 = vld [vmem:[%s502_s1] sm:$0xff] }
  0x19   :  { %v54_v23 = vadd.f32 %v424_v21, %v422_v20  ;;  %v78_v30 = vld [vmem:[%s502_s1 + $0x8] sm:$0xff]  ;;  %v79_v40 = vld [vmem:[%s502_s1 + $0x10] sm:$0xff]  ;;  %v80_v49 = vld [vmem:[%s502_s1 + $0x18] sm:$0xff] }
  0x1a   :  { %61 = vadd.xlane.f32.xlu1 %v60_v10 }
  0x1b   :  { %49 = vadd.xlane.f32.xlu0 %v48_v11 }
  0x1e   :  { %64 = vadd.xlane.f32.xlu1 %v63_v16 }
  0x1f   :  { %52 = vadd.xlane.f32.xlu0 %v51_v17 }
  0x22   :  { %67 = vadd.xlane.f32.xlu1 %v66_v22 }
  0x23   :  { %55 = vadd.xlane.f32.xlu0 %v54_v23 }
  0xa3   :  { %v59_v24 = vpop.xlane.xlu1 %58 }
  0xa4   :  { %v73_v25 = vmul.f32 0.00390625, %v59_v24  ;;  %v47_v26 = vpop.xlane.xlu0 %46 }
  0xa5   :  { %v69_v33 = vmul.f32 0.00390625, %v47_v26 }
  0xa6   :  { %v89_v28 = vmul.f32 %v77_v27, %v73_v25 }
  0xa7   :  { %v62_v29 = vpop.xlane.xlu1 %61  ;;  %v85_v43 = vmul.f32 %v77_v27, %v69_v33  ;;  %v84_v33 = vld [vmem:[%s503_s2 + $0x18] sm:$0xff] }
  0xa8   :  { %v74_v31 = vmul.f32 0.00390625, %v62_v29  ;;  %v50_v32 = vpop.xlane.xlu0 %49  ;;  %v107_v35 = vsel %vm93_vm0, %v89_v28, 0.0  ;;  %v82_v29 = vld [vmem:[%s503_s2 + $0x8] sm:$0xff] }
  0xa9   :  { %v70_v34 = vmul.f32 0.00390625, %v50_v32  ;;  %v94_v54 = vsel %vm93_vm0, %v85_v43, 0.0 }
  0xaa   :  { %v90_v36 = vmul.f32 %v78_v30, %v74_v31 }
  0xab   :  { %v86_v37 = vmul.f32 %v78_v30, %v70_v34  ;;  %v65_v38 = vpop.xlane.xlu1 %64  ;;  %v81_v30 = vld [vmem:[%s503_s2] sm:$0xff]  ;;  %v83_v34 = vld [vmem:[%s503_s2 + $0x10] sm:$0xff]  ;;  %s346_s2 = smov [#allocation5]  }
  0xac   :  { %v108_v39 = vsel %vm93_vm0, %v90_v36, 0.0  ;;  %v75_v41 = vmul.f32 0.00390625, %v65_v38  ;;  %v53_v42 = vpop.xlane.xlu0 %52  ;;  %s239_s13 = sshll.u32 %s346_s2, 4  ;;  %s240_s13 = int_to_ptr.vmem [resolvable:$true] %s239_s13 }
  0xad   :  { %v109_v44 = vadd.f32 %v108_v39, %v107_v35  ;;  %v71_v45 = vmul.f32 0.00390625, %v53_v42  ;;  %v95_v47 = vsel %vm93_vm0, %v86_v37, 0.0  ;;  %s317_s14 = scalar_lea.vmem %s240_s13, 2048  ;;  %p322_p9 = scmp.lt.s32.totalorder %s240_s13, %s240_s13 }
  0xae   :  { %v91_v46 = vmul.f32 %v79_v40, %v75_v41  ;;  %v96_v58 = vadd.f32 %v95_v47, %v94_v54  ;;  %p318_p8 = scmp.ne.s32.totalorder %s240_s13, %s317_s14  ;;  %p323_p10 = scmp.lt.s32.totalorder %s317_s14, %s317_s14 }
  0xaf   :  { %v87_v48 = vmul.f32 %v79_v40, %v71_v45  ;;  %v68_v50 = vpop.xlane.xlu1 %67 }
  0xb0   :  { %v110_v51 = vsel %vm93_vm0, %v91_v46, 0.0  ;;  %v76_v52 = vmul.f32 0.00390625, %v68_v50  ;;  %v56_v53 = vpop.xlane.xlu0 %55  ;;  %p324_p11 = por %p323_p10, %p322_p9 }
  0xb1   :  { %v111_v55 = vadd.f32 %v110_v51, %v109_v44  ;;  %v97_v56 = vsel %vm93_vm0, %v87_v48, 0.0  ;;  %v72_v57 = vmul.f32 0.00390625, %v56_v53 }
  0xb2   :  { %v92_v59 = vmul.f32 %v80_v49, %v76_v52  ;;  %v98_v61 = vadd.f32 %v97_v56, %v96_v58  ;;  %p325_p12 = pnand %p324_p11, %p318_p8 }
  0xb3   :  { %v88_v60 = vmul.f32 %v80_v49, %v72_v57 }
  0xb4   :  { %v112_v62 = vsel %vm93_vm0, %v92_v59, 0.0 }
  0xb5   :  { %v113_v63 = vadd.f32 %v112_v62, %v111_v55  ;;  %v99_v3 = vsel %vm93_vm0, %v88_v60, 0.0 }
  0xb6   :  { %v100_v7 = vadd.f32 %v99_v3, %v98_v61 }
  0xb7   :  { %v114_v10 = vrot.slane %v113_v63, 4 }
  0xb8   :  { %v101_v11 = vrot.slane %v100_v7, 4 }
  0xb9   :  { %v115_v16 = vadd.f32 %v114_v10, %v113_v63 }
  0xba   :  { %v102_v17 = vadd.f32 %v101_v11, %v100_v7 }
  0xbb   :  { %v116_v22 = vrot.slane %v115_v16, 2 }
  0xbc   :  { %v103_v23 = vrot.slane %v102_v17, 2 }
  0xbd   :  { %v117_v24 = vadd.f32 %v116_v22, %v115_v16 }
  0xbe   :  { %v104_v25 = vadd.f32 %v103_v23, %v102_v17 }
  0xbf   :  { %v118_v26 = vrot.slane %v117_v24, 1 }
  0xc0   :  { %v105_v27 = vrot.slane %v104_v25, 1 }
  0xc1   :  { %v119_v31 = vadd.f32 %v118_v26, %v117_v24 }
  0xc2   :  { %v106_v28 = vadd.f32 %v105_v27, %v104_v25 }
  0xc3   :  { %v121_v37 = vmax.f32 %v119_v31, 0.0 }
  0xc4   :  { %v120_v32 = vmax.f32 %v106_v28, 0.0 }
  0xc5   :  { %v127_v44 = vmul.f32 %v121_v37, %v82_v29  ;;  %v126_v45 = vmul.f32 %v121_v37, %v81_v30  ;;  %v129_v48 = vmul.f32 %v121_v37, %v84_v33  ;;  %v128_v49 = vmul.f32 %v121_v37, %v83_v34 }
  0xc6   :  { %v123_v35 = vmul.f32 %v120_v32, %v82_v29  ;;  %v122_v36 = vmul.f32 %v120_v32, %v81_v30  ;;  %v125_v40 = vmul.f32 %v120_v32, %v84_v33  ;;  %v124_v41 = vmul.f32 %v120_v32, %v83_v34 }
  0xc7   :  { %v145_v46 = vsel %vm93_vm0, %v127_v44, 0.0  ;;  %v142_v47 = vsel %vm93_vm0, %v126_v45, 0.0  ;;  %v151_v50 = vsel %vm93_vm0, %v129_v48, 0.0  ;;  %v148_v51 = vsel %vm93_vm0, %v128_v49, 0.0 }
  0xc8   :  { %v133_v38 = vsel %vm93_vm0, %v123_v35, 0.0  ;;  %v130_v39 = vsel %vm93_vm0, %v122_v36, 0.0  ;;  %v139_v42 = vsel %vm93_vm0, %v125_v40, 0.0  ;;  %v136_v43 = vsel %vm93_vm0, %v124_v41, 0.0 }
  0xc9   :  { %134 = vadd.xlane.f32.xlu1 %v133_v38  ;;  %131 = vadd.xlane.f32.xlu0 %v130_v39 }
  0xcd   :  { %140 = vadd.xlane.f32.xlu1 %v139_v42  ;;  %137 = vadd.xlane.f32.xlu0 %v136_v43 }
  0xd1   :  { %146 = vadd.xlane.f32.xlu1 %v145_v46  ;;  %143 = vadd.xlane.f32.xlu0 %v142_v47 }
  0xd5   :  { %152 = vadd.xlane.f32.xlu1 %v151_v50  ;;  %149 = vadd.xlane.f32.xlu0 %v148_v51 }
 0x156   :  { %v135_v52 = vpop.xlane.xlu1 %134  ;;  %v132_v53 = vpop.xlane.xlu0 %131 }
 0x157   :  { %v252_v54 = vmul.f32 -1.442695, %v135_v52  ;;  %v251_v55 = vmul.f32 -1.442695, %v132_v53 }
 0x159   :  { %263 = vpow2.f32 %v252_v54 }
 0x15a   :  { %265 = vpow2.f32 %v251_v55  ;;  %v141_v56 = vpop.xlane.xlu1 %140  ;;  %v138_v57 = vpop.xlane.xlu0 %137 }
 0x15b   :  { %v254_v58 = vmul.f32 -1.442695, %v141_v56  ;;  %v253_v59 = vmul.f32 -1.442695, %v138_v57 }
 0x15d   :  { %267 = vpow2.f32 %v254_v58 }
 0x15e   :  { %269 = vpow2.f32 %v253_v59  ;;  %v147_v60 = vpop.xlane.xlu1 %146  ;;  %v144_v61 = vpop.xlane.xlu0 %143 }
 0x15f   :  { %v256_v62 = vmul.f32 -1.442695, %v147_v60  ;;  %v255_v63 = vmul.f32 -1.442695, %v144_v61 }
 0x161   :  { %271 = vpow2.f32 %v256_v62 }
 0x162   :  { %273 = vpow2.f32 %v255_v63  ;;  %v153_v3 = vpop.xlane.xlu1 %152  ;;  %v150_v7 = vpop.xlane.xlu0 %149 }
 0x163   :  { %v264_v10 = vpop.eup %263  ;;  %v258_v11 = vmul.f32 -1.442695, %v153_v3  ;;  %v257_v22 = vmul.f32 -1.442695, %v150_v7 }
 0x164   :  { %v266_v16 = vpop.eup %265  ;;  %v179_v17 = vadd.f32 1.0, %v264_v10 }
 0x165   :  { %v178_v23 = vadd.f32 1.0, %v266_v16  ;;  %275 = vpow2.f32 %v258_v11 }
 0x166   :  { %277 = vrcp.f32 %v179_v17 }
 0x167   :  { %v268_v24 = vpop.eup %267  ;;  %279 = vrcp.f32 %v178_v23 }
 0x168   :  { %v270_v25 = vpop.eup %269  ;;  %v181_v26 = vadd.f32 1.0, %v268_v24  ;;  %281 = vpow2.f32 %v257_v22 }
 0x169   :  { %v180_v27 = vadd.f32 1.0, %v270_v25 }
 0x16a   :  { %283 = vrcp.f32 %v181_v26 }
 0x16b   :  { %v272_v28 = vpop.eup %271  ;;  %285 = vrcp.f32 %v180_v27 }
 0x16c   :  { %v274_v29 = vpop.eup %273  ;;  %v183_v30 = vadd.f32 1.0, %v272_v28 }
 0x16d   :  { %v182_v31 = vadd.f32 1.0, %v274_v29 }
 0x16e   :  { %287 = vrcp.f32 %v183_v30 }
 0x16f   :  { %v276_v32 = vpop.eup %275  ;;  %289 = vrcp.f32 %v182_v31 }
 0x170   :  { %v278_v33 = vpop.eup %277  ;;  %v185_v34 = vadd.f32 1.0, %v276_v32 }
 0x171   :  { %v280_v35 = vpop.eup %279  ;;  %v204_v36 = vmul.f32 %v278_v33, %v398_v8  ;;  %v205_v37 = vmul.f32 %v278_v33, %v400_v9 }
 0x172   :  { %v282_v38 = vpop.eup %281  ;;  %v202_v39 = vmul.f32 %v280_v35, %v386_v2  ;;  %v203_v40 = vmul.f32 %v280_v35, %v390_v4  ;;  %291 = vrcp.f32 %v185_v34 }
 0x173   :  { %220 = vst [vmem:[#allocation5 + $0x10] sm:$0xff] %v204_v36  ;;  %221 = vst [vmem:[#allocation5 + $0x18] sm:$0xff] %v205_v37  ;;  %v184_v41 = vadd.f32 1.0, %v282_v38 }
 0x174   :  { %v284_v42 = vpop.eup %283  ;;  %218 = vst [vmem:[#allocation5] sm:$0xff] %v202_v39  ;;  %219 = vst [vmem:[#allocation5 + $0x8] sm:$0xff] %v203_v40 }
 0x175   :  { %v286_v43 = vpop.eup %285  ;;  %v208_v44 = vmul.f32 %v284_v42, %v422_v20  ;;  %v209_v45 = vmul.f32 %v284_v42, %v424_v21  ;;  %293 = vrcp.f32 %v184_v41 }
 0x176   :  { %v206_v8 = vmul.f32 %v286_v43, %v410_v14  ;;  %v207_v9 = vmul.f32 %v286_v43, %v412_v15 }
 0x177   :  { %224 = vst [vmem:[#allocation5 + $0x30] sm:$0xff] %v208_v44  ;;  %225 = vst [vmem:[#allocation5 + $0x38] sm:$0xff] %v209_v45 }
 0x178   :  { %v288_v2 = vpop.eup %287  ;;  %222 = vst [vmem:[#allocation5 + $0x20] sm:$0xff] %v206_v8  ;;  %223 = vst [vmem:[#allocation5 + $0x28] sm:$0xff] %v207_v9 }
 0x179   :  { %v290_v4 = vpop.eup %289  ;;  %v212_v46 = vmul.f32 %v288_v2, %v392_v5  ;;  %v213_v47 = vmul.f32 %v288_v2, %v394_v6 }
 0x17a   :  { %v210_v48 = vmul.f32 %v290_v4, %v382_v0  ;;  %v211_v20 = vmul.f32 %v290_v4, %v384_v1 }
 0x17b   :  { %228 = vst [vmem:[#allocation5 + $0x50] sm:$0xff] %v212_v46  ;;  %229 = vst [vmem:[#allocation5 + $0x58] sm:$0xff] %v213_v47 }
 0x17c   :  { %v292_v21 = vpop.eup %291  ;;  %226 = vst [vmem:[#allocation5 + $0x40] sm:$0xff] %v210_v48  ;;  %227 = vst [vmem:[#allocation5 + $0x48] sm:$0xff] %v211_v20 }
 0x17d   :  { %v216_v14 = vmul.f32 %v292_v21, %v418_v18  ;;  %v217_v15 = vmul.f32 %v292_v21, %v420_v19 }
 0x17f   :  { %v294_v49 = vpop.eup %293  ;;  %232 = vst [vmem:[#allocation5 + $0x70] sm:$0xff] %v216_v14  ;;  %233 = vst [vmem:[#allocation5 + $0x78] sm:$0xff] %v217_v15 }
 0x180   :  { %v214_v5 = vmul.f32 %v294_v49, %v406_v12  ;;  %v215_v0 = vmul.f32 %v294_v49, %v408_v13 }
 0x182   :  { %230 = vst [vmem:[#allocation5 + $0x60] sm:$0xff] %v214_v5  ;;  %231 = vst [vmem:[#allocation5 + $0x68] sm:$0xff] %v215_v0 }
 0x183   :  { %328 = shalt.err (!%p325_p12)
}
 0x184   :  { %s329_s17 = scalar_lea.hbm %s504_s3, 2048 }
 0x185   :  { %p330_p13 = scmp.ne.s32.totalorder %s504_s3, %s329_s17  ;;  %p333_p0 = scmp.lt.u32.totalorder %s329_s17, %s504_s3 }
 0x187   :  { %p335_p1 = pnand %p333_p0, %p330_p13 }
 0x189   :  { %338 = shalt.err (!%p335_p1)
}
 0x18a   :  { %245 = dma.vmem_to_hbm [thread:$0]  %s240_s13, 2048, %s504_s3, [#allocation4], %s344_s22, %s344_s22, %s345_s23  }
 0x18b   :  { %341 = dma.done.wait [#allocation4], 2048  }
 0x18c   :  { %342 = vsyncadd [#allocation4], 4294965248 }
 0x18d   :  { %249 = vsyncpa [#allocation3], 1 }
 0x18e   :  { %250 = vsyncpa [#allocation4], 1 }

</bundles_post_ra>
